<compile_context>
chip_gen: v5e
topology: v5e:2x2
jax: 0.10.0
libtpu: 0.0.40
codegen_flags: <defaults>
</compile_context>

<pallas_src>
import functools
import math

import jax
import jax.numpy as jnp
import numpy as np
from jax.experimental import pallas as pl
from jax.experimental.pallas import tpu as pltpu


def _round_up(a, m):
    return -(-a // m) * m


def _tv_kernel(x_ref, wh_ref, ww_ref, out_ref, *, w):
    """One (TC, TH*W) tile: weighted sums of squared neighbour differences."""
    x = x_ref[...]                                        # (TC, Lt), input dtype

    # Vertical neighbour: x[k] - x[k - W] over the row-major flattened tile.
    dh = (x - pltpu.roll(x, shift=w, axis=1)).astype(jnp.float32)
    col_h = jnp.sum(dh * dh, axis=0, keepdims=True)       # (1, Lt) per-lane partial

    # Horizontal neighbour: x[k] - x[k - 1].
    dw = (x - pltpu.roll(x, shift=1, axis=1)).astype(jnp.float32)
    col_w = jnp.sum(dw * dw, axis=0, keepdims=True)       # (1, Lt)

    # Precomputed weights (0 where the neighbour is invalid) are applied after
    # the sublane reduction: no (TC, Lt) broadcast, one multiply per lane only.
    s = jnp.sum(col_h * wh_ref[...]) + jnp.sum(col_w * ww_ref[...])

    # Lane-dense (8, 128) store of the per-block partial sum.
    out_ref[...] = jnp.zeros(out_ref.shape, jnp.float32) + s


def tv_loss(x, tv_loss_weight=1.0, *, target_block_elems=2 * 1024 * 1024):
    """Matches TVLoss.forward for NCHW input x."""
    b, c, h, w = x.shape
    if h < 2 or w < 2:
        # The PyTorch module divides by zero here (0/0 -> nan at runtime).
        return jnp.full((), jnp.nan, dtype=jnp.float32)

    count_h = c * (h - 1) * w            # numel of x[:, :, 1:, :] per batch element
    count_w = c * h * (w - 1)            # numel of x[:, :, :, 1:] per batch element
    scale_h = float(tv_loss_weight) * 2.0 / (float(count_h) * float(b))
    scale_w = float(tv_loss_weight) * 2.0 / (float(count_w) * float(b))

    n = b * c
    l = h * w
    itemsize = jnp.dtype(x.dtype).itemsize
    sub = 8 * max(1, 4 // itemsize)      # sublane multiple: f32 -> 8, bf16 -> 16
    th_step = 128 // math.gcd(w, 128)    # H-tile heights keeping TH*W % 128 == 0

    # ---- choose the H-tile height TH (usually TH == H: no H tiling) ----
    tile_h = (sub * l > target_block_elems) or (
        n <= sub and sub * l > 128 * 1024 and h >= 2 * th_step)
    if tile_h:
        th_budget = max(1, target_block_elems // (sub * w))   # VMEM budget
        th_par = -(-h // 8)                                   # aim for ~8 H-tiles
        th = max(th_step, (min(th_budget, th_par) // th_step) * th_step)
        if th >= h:
            tile_h = False
    if not tile_h:
        th = h
    hb = -(-h // th)
    h_pad = hb * th
    lt = th * w                          # lanes per block (multiple of 128 if hb > 1)

    # ---- choose channels-per-block TC ----
    if tile_h:
        tc = sub
    else:
        tc = max(sub, min(_round_up(n, sub),
                          (target_block_elems // lt) // sub * sub))
        # Keep >=2 (ideally >=8) blocks along the parallel N axis so both
        # TensorCores get work and the DMA pipeline has depth, but don't shrink
        # a block below ~1M elements just to add more grid steps.
        for nblk in (8, 4, 2):
            cand = _round_up(-(-n // nblk), sub)
            if cand >= tc:
                break
            if cand * lt >= (1 << 20) or nblk == 2:
                tc = cand
                break
    nb = -(-n // tc)
    n_pad = nb * tc

    # ---- layout: zero padding contributes 0 to the kernel sums (see below) ----
    x3 = x.reshape(n, h, w)
    x_padded = x3
    if h_pad != h:
        x_padded = jnp.pad(x_padded, ((0, 0), (0, h_pad - h), (0, 0)))
    if n_pad != n:
        x_padded = jnp.pad(x_padded, ((0, n_pad - n), (0, 0), (0, 0)))
    x_flat = x_padded.reshape(n_pad, h_pad * w)

    # ---- host-precomputed per-lane weights (shared by every block) ----
    k = np.arange(lt)
    wgt_h = jnp.asarray(np.where(k >= w, scale_h, 0.0),
                        dtype=jnp.float32).reshape(1, lt)
    wgt_w = jnp.asarray(np.where(k % w != 0, scale_w, 0.0),
                        dtype=jnp.float32).reshape(1, lt)

    # ---- VMEM budget: double-buffered input + ~4 f32 temporaries + weights ----
    blk = tc * lt
    vmem_limit = 2 * blk * itemsize + 4 * blk * 4 + 4 * lt * 4 + (2 << 20)
    vmem_limit = int(min(56 << 20, max(16 << 20, vmem_limit)))
    # TODO(synk): degenerate shapes (huge odd W with tiny H) can still produce a
    # single oversized block; those would additionally need W tiling.

    kernel = functools.partial(_tv_kernel, w=w)

    partials = pl.pallas_call(
        kernel,
        out_shape=jax.ShapeDtypeStruct((nb, hb, 8, 128), jnp.float32),
        grid_spec=pltpu.PrefetchScalarGridSpec(
            num_scalar_prefetch=0,
            grid=(nb, hb),
            in_specs=[
                pl.BlockSpec((tc, lt), lambda i, j: (i, j)),
                pl.BlockSpec((1, lt), lambda i, j: (0, 0)),   # resident, fetched once
                pl.BlockSpec((1, lt), lambda i, j: (0, 0)),   # resident, fetched once
            ],
            out_specs=pl.BlockSpec((1, 1, 8, 128), lambda i, j: (i, j, 0, 0)),
        ),
        compiler_params=pltpu.CompilerParams(
            dimension_semantics=("parallel", "parallel"),
            vmem_limit_bytes=vmem_limit,
        ),
    )(x_flat, wgt_h, wgt_w)

    total = jnp.sum(partials[:, :, 0, 0])

    if hb > 1:
        # Vertical seams between H-tiles (row j*TH vs j*TH - 1): the in-kernel
        # weights skip local row 0 of every tile, so add the seam terms here
        # (tiny: (hb-1) * N * W elements, pure JAX outside the kernel).
        idx_top = np.arange(1, hb) * th               # all < h by construction
        top = jnp.take(x3, idx_top, axis=1).astype(jnp.float32)
        bot = jnp.take(x3, idx_top - 1, axis=1).astype(jnp.float32)
        total = total + scale_h * jnp.sum((top - bot) ** 2)
        if h % th != 0:
            # The kernel counted (0 - x[:, H-1, :])^2 against the zero padding
            # inside the last (partial) tile; remove it.
            last = x3[:, h - 1, :].astype(jnp.float32)
            total = total - scale_h * jnp.sum(last * last)

    return total


def tv_loss_ref(x, tv_loss_weight=1.0):
    """Pure-JAX reference replicating the PyTorch forward."""
    b, c, h, w = x.shape
    count_h = c * (h - 1) * w
    count_w = c * h * (w - 1)
    xf = x.astype(jnp.float32)
    h_tv = jnp.sum((xf[:, :, 1:, :] - xf[:, :, : h - 1, :]) ** 2)
    w_tv = jnp.sum((xf[:, :, :, 1:] - xf[:, :, :, : w - 1]) ** 2)
    return tv_loss_weight * 2.0 * (h_tv / count_h + w_tv / count_w) / b


if __name__ == "__main__":
    key = jax.random.PRNGKey(0)
    k1, k2 = jax.random.split(key)

    # Small NCHW input consistent with the module.
    x = jax.random.normal(k1, (2, 4, 16, 16), dtype=jnp.float32)
    out = jax.block_until_ready(tv_loss(x, tv_loss_weight=1.0))
    ref = tv_loss_ref(x, tv_loss_weight=1.0)
    assert jnp.allclose(out, ref, rtol=1e-5, atol=1e-5), (out, ref)

    # Exercise the H-tiled path (multiple H-tiles, seams, partial last tile)
    # by forcing a tiny per-block element budget.
    x2 = jax.random.normal(k2, (2, 3, 20, 128), dtype=jnp.float32)
    out2 = jax.block_until_ready(
        tv_loss(x2, tv_loss_weight=0.5, target_block_elems=4096))
    ref2 = tv_loss_ref(x2, tv_loss_weight=0.5)
    assert jnp.allclose(out2, ref2, rtol=1e-4, atol=1e-5), (out2, ref2)

    print("KERNEL_OK")
</pallas_src>

<mosaic_0001>
module attributes {stable_mosaic.version = 11 : i64} {
  func.func @_tv_kernel(%arg0: i32, %arg1: i32, %arg2: memref<8x256xf32, #tpu.memory_space<vmem>>, %arg3: memref<1x256xf32, #tpu.memory_space<vmem>>, %arg4: memref<1x256xf32, #tpu.memory_space<vmem>>, %arg5: memref<1x1x8x128xf32, #tpu.memory_space<vmem>>) attributes {dimension_semantics = [#tpu.dimension_semantics<parallel>, #tpu.dimension_semantics<parallel>], iteration_bounds = array<i64: 1, 1>, scalar_prefetch = 0 : i64, scratch_operands = 0 : i64, tpu.core_type = #tpu.core_type<tc>, window_params = [{transform_indices = @transform_0, window_bounds = array<i64: 8, 256>}, {pipeline_mode = #tpu.pipeline_mode<synchronous>, transform_indices = @transform_1, window_bounds = array<i64: 1, 256>}, {pipeline_mode = #tpu.pipeline_mode<synchronous>, transform_indices = @transform_2, window_bounds = array<i64: 1, 256>}, {transform_indices = @transform_3, window_bounds = array<i64: 1, 1, 8, 128>}]} {
    %c0 = arith.constant 0 : index
    %c0_0 = arith.constant 0 : index
    %0 = vector.load %arg2[%c0, %c0_0] : memref<8x256xf32, #tpu.memory_space<vmem>>, vector<8x256xf32>
    %c16_i32 = arith.constant 16 : i32
    %1 = tpu.dynamic_rotate %0 by %c16_i32 dim 1 : vector<8x256xf32>, i32 -> vector<8x256xf32>
    %2 = arith.subf %0, %1 : vector<8x256xf32>
    %3 = arith.mulf %2, %2 : vector<8x256xf32>
    %cst = arith.constant dense<0.000000e+00> : vector<256xf32>
    %4 = vector.multi_reduction <add>, %3, %cst [0] : vector<8x256xf32> to vector<256xf32>
    %5 = vector.shape_cast %4 : vector<256xf32> to vector<1x256xf32>
    %c1_i32 = arith.constant 1 : i32
    %6 = tpu.dynamic_rotate %0 by %c1_i32 dim 1 : vector<8x256xf32>, i32 -> vector<8x256xf32>
    %7 = arith.subf %0, %6 : vector<8x256xf32>
    %8 = arith.mulf %7, %7 : vector<8x256xf32>
    %cst_1 = arith.constant dense<0.000000e+00> : vector<256xf32>
    %9 = vector.multi_reduction <add>, %8, %cst_1 [0] : vector<8x256xf32> to vector<256xf32>
    %10 = vector.shape_cast %9 : vector<256xf32> to vector<1x256xf32>
    %c0_2 = arith.constant 0 : index
    %c0_3 = arith.constant 0 : index
    %11 = vector.load %arg3[%c0_2, %c0_3] : memref<1x256xf32, #tpu.memory_space<vmem>>, vector<1x256xf32>
    %12 = arith.mulf %5, %11 : vector<1x256xf32>
    %13 = vector.shape_cast %12 : vector<1x256xf32> to vector<1x1x256xf32>
    %cst_4 = arith.constant dense<0.000000e+00> : vector<1xf32>
    %14 = vector.multi_reduction <add>, %13, %cst_4 [1, 2] : vector<1x1x256xf32> to vector<1xf32>
    %15 = vector.shape_cast %14 : vector<1xf32> to vector<1x1x1xf32>
    %16 = vector.extract %15[0, 0, 0] : f32 from vector<1x1x1xf32>
    %c0_5 = arith.constant 0 : index
    %c0_6 = arith.constant 0 : index
    %17 = vector.load %arg4[%c0_5, %c0_6] : memref<1x256xf32, #tpu.memory_space<vmem>>, vector<1x256xf32>
    %18 = arith.mulf %10, %17 : vector<1x256xf32>
    %19 = vector.shape_cast %18 : vector<1x256xf32> to vector<1x1x256xf32>
    %cst_7 = arith.constant dense<0.000000e+00> : vector<1xf32>
    %20 = vector.multi_reduction <add>, %19, %cst_7 [1, 2] : vector<1x1x256xf32> to vector<1xf32>
    %21 = vector.shape_cast %20 : vector<1xf32> to vector<1x1x1xf32>
    %22 = vector.extract %21[0, 0, 0] : f32 from vector<1x1x1xf32>
    %23 = arith.addf %16, %22 : f32
    %cst_8 = arith.constant 0.000000e+00 : f32
    %24 = vector.broadcast %cst_8 : f32 to vector<1x1x8x128xf32>
    %25 = vector.broadcast %23 : f32 to vector<1x1x8x128xf32>
    %26 = arith.addf %24, %25 : vector<1x1x8x128xf32>
    %c0_9 = arith.constant 0 : index
    %c0_10 = arith.constant 0 : index
    %c0_11 = arith.constant 0 : index
    %c0_12 = arith.constant 0 : index
    %27 = vector.load %arg5[%c0_9, %c0_10, %c0_11, %c0_12] : memref<1x1x8x128xf32, #tpu.memory_space<vmem>>, vector<1x1x8x128xf32>
    tpu.vector_store %arg5[%c0_9, %c0_10, %c0_11, %c0_12], %26 {strides = array<i32>} : memref<1x1x8x128xf32, #tpu.memory_space<vmem>>, vector<1x1x8x128xf32>,
    return
  }
  func.func @transform_0(%arg0: i32, %arg1: i32) -> (i32, i32) {
    %c0_i32 = arith.constant 0 : i32
    return %arg0, %arg1 : i32, i32
  }
  func.func @transform_1(%arg0: i32, %arg1: i32) -> (i32, i32) {
    %c0_i32 = arith.constant 0 : i32
    %c0_i32_0 = arith.constant 0 : i32
    %c0_i32_1 = arith.constant 0 : i32
    return %c0_i32, %c0_i32_0 : i32, i32
  }
  func.func @transform_2(%arg0: i32, %arg1: i32) -> (i32, i32) {
    %c0_i32 = arith.constant 0 : i32
    %c0_i32_0 = arith.constant 0 : i32
    %c0_i32_1 = arith.constant 0 : i32
    return %c0_i32, %c0_i32_0 : i32, i32
  }
  func.func @transform_3(%arg0: i32, %arg1: i32) -> (i32, i32, i32, i32) {
    %c0_i32 = arith.constant 0 : i32
    %c0_i32_0 = arith.constant 0 : i32
    %c0_i32_1 = arith.constant 0 : i32
    return %arg0, %arg1, %c0_i32, %c0_i32_0 : i32, i32, i32, i32
  }
}

</mosaic_0001>

<bundles_post_ra>
// kernel: tpu_custom_call.1
= control target key start
LH: loop header
LB: loop body
LE: loop exit
PB: predicated region body
PF: predicated region fallthrough
CT: control target
= control target key end

     0   :  { %8 = vsyncpa [#allocation3], 0  ;;  %s319_s0 = inlined_call_operand.hbm [shape: f32[8,256], index: 0, kind: input, shape index: {}]   ;;  %s320_s1 = inlined_call_operand.hbm [shape: f32[1,256], index: 1, kind: input, shape index: {}]   ;;  %s321_s2 = inlined_call_operand.hbm [shape: f32[1,256], index: 2, kind: input, shape index: {}]   ;;  %s322_s3 = inlined_call_operand.hbm [shape: f32[1,1,8,128], index: 3, kind: output, shape index: {}]  }
   0x1   :  { %9 = vsyncpa [#allocation6], 0  ;;  %s27_s14 = sshll.u32 %s320_s1, 4  ;;  %s28_s14 = int_to_ptr.hbm [resolvable:$true] %s27_s14 }
   0x2   :  { %10 = vsyncpa [#allocation4], 0  ;;  %s281_s15 = smov [#allocation5]   ;;  %s16_s19 = sshll.u32 %s319_s0, 4  ;;  %s17_s19 = int_to_ptr.hbm [resolvable:$true] %s16_s19 }
   0x3   :  { %s29_s16 = sshll.u32 %s281_s15, 4  ;;  %s282_s20 = smov [#allocation2]   ;;  %s30_s16 = int_to_ptr.vmem [resolvable:$true] %s29_s16 }
   0x4   :  { %32 = dma.hbm_to_vmem [thread:$0]  %s28_s14, 32, %s30_s16, [#allocation6]  }
   0x5   :  { %s18_s21 = sshll.u32 %s282_s20, 4  ;;  %s38_s24 = sshll.u32 %s321_s2, 4  ;;  %s19_s21 = int_to_ptr.vmem [resolvable:$true] %s18_s21  ;;  %s39_s24 = int_to_ptr.hbm [resolvable:$true] %s38_s24 }
   0x6   :  { %21 = dma.hbm_to_vmem [thread:$0]  %s17_s19, 256, %s19_s21, [#allocation3]  }
   0x7   :  { %s283_s1 = smov [#allocation7]  }
   0x8   :  { %s40_s25 = sshll.u32 %s283_s1, 4  ;;  %s41_s25 = int_to_ptr.vmem [resolvable:$true] %s40_s25 }
   0x9   :  { %43 = dma.hbm_to_vmem [thread:$0]  %s39_s24, 32, %s41_s25, [#allocation6]  }
   0xa   :  { %275 = dma.done.wait [#allocation3], 256  }
   0xb   :  { %276 = vsyncadd [#allocation3], 4294967040 }
   0xc   :  { %277 = dma.done.wait [#allocation6], 64  }
   0xd   :  { %278 = vsyncadd [#allocation6], 4294967232  ;;  %v56_v0 = vld [vmem:[#allocation2] sm:$0xff]  ;;  %s284_s0 = smov 1   ;;  %s285_s26 = smov 16   ;;  %v57_v1 = vld [vmem:[#allocation2 + $0x8] sm:$0xff]  ;;  %v62_v2 = vlaneseq }
   0xe   :  { %83 = vrot.lane.b32.xlu1 %v56_v0, %s284_s0  ;;  %58 = vrot.lane.b32.xlu0 %v56_v0, %s285_s26  ;;  %v106_v32 = vld [vmem:[#allocation5] sm:$0x3]  ;;  %v127_v43 = vld [vmem:[#allocation7] sm:$0x3]  ;;  %vm114_vm2 = vcmask 1040384   ;;  %s286_s2 = smov [#allocation8]  }
   0xf   :  { %v63_v5 = vand.u32 127, %v62_v2  ;;  %v108_v37 = vperm.slane %v106_v32, 0  ;;  %v109_v38 = vperm.slane %v106_v32, 1  ;;  %v129_v46 = vperm.slane %v127_v43, 0  ;;  %s156_s27 = sshll.u32 %s286_s2, 4  ;;  %s158_s4 = sshll.u32 %s322_s3, 4  ;;  %s157_s27 = int_to_ptr.vmem [resolvable:$true] %s156_s27  ;;  %s159_s4 = int_to_ptr.hbm [resolvable:$true] %s158_s4 }
  0x10   :  { %v130_v47 = vperm.slane %v127_v43, 1 }
  0x11   :  { %vm87_vm0 = vcmp.lt.s32.totalorder %v63_v5, 1  ;;  %vm64_vm1 = vcmp.lt.s32.totalorder %v63_v5, 16 }
  0x16   :  { %85 = vrot.lane.b32.xlu1 %v57_v1, %s284_s0  ;;  %60 = vrot.lane.b32.xlu0 %v57_v1, %s285_s26 }
  0x80   :  { %v84_v3 = vpop.permute.xlu1 %83  ;;  %v59_v4 = vpop.permute.xlu0 %58 }
  0x88   :  { %v86_v6 = vpop.permute.xlu1 %85  ;;  %v61_v7 = vpop.permute.xlu0 %60 }
  0x89   :  { %v88_v8 = vsel %vm87_vm0, %v84_v3, %v86_v6  ;;  %v89_v9 = vsel %vm87_vm0, %v86_v6, %v84_v3  ;;  %v65_v10 = vsel %vm64_vm1, %v59_v4, %v61_v7  ;;  %v66_v11 = vsel %vm64_vm1, %v61_v7, %v59_v4 }
  0x8a   :  { %v90_v12 = vsub.f32 %v56_v0, %v89_v9  ;;  %v91_v13 = vsub.f32 %v57_v1, %v88_v8  ;;  %v67_v14 = vsub.f32 %v56_v0, %v66_v11  ;;  %v68_v15 = vsub.f32 %v57_v1, %v65_v10 }
  0x8c   :  { %v92_v16 = vmul.f32 %v90_v12, %v90_v12  ;;  %v93_v17 = vmul.f32 %v91_v13, %v91_v13  ;;  %v69_v18 = vmul.f32 %v67_v14, %v67_v14  ;;  %v70_v19 = vmul.f32 %v68_v15, %v68_v15 }
  0x8e   :  { %v94_v20 = vrot.slane %v92_v16, 4  ;;  %v100_v21 = vrot.slane %v93_v17, 4  ;;  %v71_v22 = vrot.slane %v69_v18, 4  ;;  %v77_v23 = vrot.slane %v70_v19, 4 }
  0x90   :  { %v95_v24 = vadd.f32 %v94_v20, %v92_v16  ;;  %v101_v25 = vadd.f32 %v100_v21, %v93_v17  ;;  %v72_v26 = vadd.f32 %v71_v22, %v69_v18  ;;  %v78_v27 = vadd.f32 %v77_v23, %v70_v19 }
  0x92   :  { %v96_v28 = vrot.slane %v95_v24, 2  ;;  %v102_v29 = vrot.slane %v101_v25, 2  ;;  %v73_v30 = vrot.slane %v72_v26, 2  ;;  %v79_v31 = vrot.slane %v78_v27, 2 }
  0x94   :  { %v97_v33 = vadd.f32 %v96_v28, %v95_v24  ;;  %v103_v34 = vadd.f32 %v102_v29, %v101_v25  ;;  %v74_v35 = vadd.f32 %v73_v30, %v72_v26  ;;  %v80_v36 = vadd.f32 %v79_v31, %v78_v27 }
  0x96   :  { %v75_v39 = vrot.slane %v74_v35, 1  ;;  %v81_v40 = vrot.slane %v80_v36, 1  ;;  %v98_v41 = vrot.slane %v97_v33, 1  ;;  %v104_v42 = vrot.slane %v103_v34, 1 }
  0x98   :  { %v76_v44 = vadd.f32 %v75_v39, %v74_v35  ;;  %v82_v45 = vadd.f32 %v81_v40, %v80_v36  ;;  %v99_v50 = vadd.f32 %v98_v41, %v97_v33  ;;  %v105_v51 = vadd.f32 %v104_v42, %v103_v34 }
  0x9a   :  { %v112_v48 = vmul.f32 %v108_v37, %v76_v44  ;;  %v113_v49 = vmul.f32 %v109_v38, %v82_v45  ;;  %v133_v55 = vmul.f32 %v129_v46, %v99_v50  ;;  %v134_v56 = vmul.f32 %v130_v47, %v105_v51 }
  0x9c   :  { %v115_v52 = vsel %vm114_vm2, %v112_v48, 0.0  ;;  %v116_v53 = vsel %vm114_vm2, %v113_v49, 0.0  ;;  %v135_v57 = vsel %vm114_vm2, %v133_v55, 0.0  ;;  %v136_v58 = vsel %vm114_vm2, %v134_v56, 0.0 }
  0x9d   :  { %v117_v54 = vadd.f32 %v116_v53, %v115_v52  ;;  %v137_v59 = vadd.f32 %v136_v58, %v135_v57 }
  0x9f   :  { %118 = vadd.xlane.f32.xlu2 %v117_v54 }
  0xa7   :  { %138 = vadd.xlane.f32.xlu2 %v137_v59 }
 0x112   :  { %v119_v60 = vpop.xlane.xlu2 %118 }
 0x113   :  { %v120_v61 = vrot.slane %v119_v60, 4 }
 0x115   :  { %v121_v62 = vadd.f32 %v120_v61, %v119_v60 }
 0x117   :  { %v122_v63 = vrot.slane %v121_v62, 2 }
 0x119   :  { %v123_v0 = vadd.f32 %v122_v63, %v121_v62 }
 0x11a   :  { %v139_v1 = vpop.xlane.xlu2 %138 }
 0x11b   :  { %v140_v2 = vrot.slane %v139_v1, 4  ;;  %v124_v3 = vrot.slane %v123_v0, 1 }
 0x11d   :  { %v141_v4 = vadd.f32 %v140_v2, %v139_v1  ;;  %v125_v5 = vadd.f32 %v124_v3, %v123_v0 }
 0x11f   :  { %v142_v6 = vrot.slane %v141_v4, 2  ;;  %169 = vpush %v125_v5 }
 0x121   :  { %v143_v7 = vadd.f32 %v142_v6, %v141_v4 }
 0x123   :  { %v144_v8 = vrot.slane %v143_v7, 1 }
 0x125   :  { %v145_v9 = vadd.f32 %v144_v8, %v143_v7 }
 0x127   :  { %171 = vpush %v145_v9 }
 0x150   :  { %s170_s28 = spop %169 }
 0x158   :  { %s172_s5 = spop %171 }
 0x159   :  { %s147_s6 = sadd.f32 %s172_s5, %s170_s28 }
 0x15b   :  { %v148_v10 = vstv %s147_s6 }
 0x15c   :  { %150 = vst [vmem:[#allocation8] sm:$0xff] %v148_v10 }
 0x15d   :  { %161 = dma.vmem_to_hbm [thread:$0]  %s157_s27, 128, %s159_s4, [#allocation4]  }
 0x15e   :  { %279 = dma.done.wait [#allocation4], 128  }
 0x15f   :  { %280 = vsyncadd [#allocation4], 4294967168 }
 0x160   :  { %166 = vsyncpa [#allocation3], 1 }
 0x161   :  { %167 = vsyncpa [#allocation6], 1 }
 0x162   :  { %168 = vsyncpa [#allocation4], 1 }

</bundles_post_ra>
